<compile_context>
chip_gen: v6e
topology: v6e:2x2x1
jax: 0.10.0
libtpu: 0.0.40
codegen_flags: <defaults>
</compile_context>

<pallas_src>
import functools
import math

import jax
import jax.numpy as jnp
import numpy as np
from jax.experimental import pallas as pl
from jax.experimental.pallas import tpu as pltpu


def _residual_block_kernel(x_ref, mask_ref, pos_ref, w1_ref, w2_ref, pvec_ref,
                           out_ref, *, dilation, kernel_size, left_pad,
                           num_bottleneck, row_len):
    """One grid step processes a (C, W) slab, W = batch_block * L (lane-dense)."""
    C, W = x_ref.shape
    Cb = num_bottleneck
    K = kernel_size
    L = row_len

    x = x_ref[...]                               # (C, W) f32
    pos = pos_ref[...]                           # (1, W) f32, within-row position
    pvec = pvec_ref[...]                         # (P, 4) packed per-channel params
    bn1_scale = pvec[:C, 0:1]                    # (C, 1)
    bn1_shift = pvec[:C, 1:2]                    # (C, 1)
    b2 = pvec[:C, 2:3]                           # (C, 1)
    b1 = pvec[:Cb, 3:4]                          # (Cb, 1) -- BN2 already folded in

    # ---- BatchNorm1d (eval) + ReLU ----
    y = jnp.maximum(x * bn1_scale + bn1_shift, 0.0)

    # ---- dilated Conv1d (padding='same'), BN2 folded into the weights ----
    #   h[:, q] = sum_k (W1_k @ y)[:, q + sh_k],   sh_k = k*dilation - left_pad,
    # realized as K small accumulated matmuls whose (Cb, W) results are lane-rotated
    # by -sh_k; a per-tap mask (compare of the position row against constants)
    # re-creates PyTorch's zero 'same' padding at every batch-row boundary.
    acc = None
    for k in range(K):                           # static, unrolled
        t = jnp.dot(w1_ref[k], y, preferred_element_type=jnp.float32)   # (Cb, W)
        sh = k * dilation - left_pad
        off = (-sh) % W
        if off:
            # static lane rotate: rotated[:, q] = t[:, (q + sh) mod W]
            t = jnp.concatenate([t[:, W - off:], t[:, :W - off]], axis=1)
        if sh != 0:
            valid = (pos + float(sh) >= 0.0) & (pos + float(sh) < float(L))
            t = t * valid.astype(jnp.float32)
        acc = t if acc is None else acc + t

    h = jnp.maximum(acc + b1, 0.0)               # (folded BN2) + ReLU

    # ---- 1x1 Conv1d == matmul, then sequence mask and residual add ----
    z = jnp.dot(w2_ref[...], h, preferred_element_type=jnp.float32) + b2
    out_ref[...] = (z * mask_ref[...] + x).astype(out_ref.dtype)


def residual_block(x, mask, params, *, dilation, kernel_size, eps=1e-5,
                   batch_block=None):
    N, C, L = x.shape
    assert params["w2"].shape[-1] == 1, "conv2 must be 1x1 for the BN2 fold"
    Cb = params["w1"].shape[0]
    K = kernel_size
    total_pad = dilation * (K - 1)
    left_pad = total_pad // 2

    # --- choose how many batch rows fold into one lane-dense slab -------------
    # The kernel is HBM-bandwidth bound (~8 FLOP/byte), so pick the largest slab
    # such that: (a) W = Nb*L is a multiple of 128 (unmasked lane-dense stores),
    # (b) the double-buffered working set stays well inside scoped VMEM on every
    # generation (v7x: 64 MiB physical), and (c) the grid keeps >= 2 steps when
    # N >= 2 so both v7x TensorCores get sharded work.
    if batch_block is None:
        slab_budget = 2 * 1024 * 1024            # bytes for one f32 (C, W) x-slab
        cands = [nb for nb in range(1, N + 1)
                 if N % nb == 0
                 and (nb * L) % 128 == 0
                 and C * nb * L * 4 <= slab_budget]
        two_step = [nb for nb in cands if N // nb >= 2]
        if two_step:
            batch_block = max(two_step)
        elif cands:
            batch_block = max(cands)
        else:
            batch_block = N                      # single block: block dims == array dims
    Nb = batch_block
    assert N % Nb == 0, "batch_block must divide the batch size"
    W = Nb * L
    slab_bytes = C * W * 4
    # ~5-7x live multiplier over the x-slab after removing the stacked-tap operand,
    # plus double-buffered in/out; give comfortable headroom but stay under v7x VMEM.
    vmem_limit = int(min(48 * 1024 * 1024, max(16 * 1024 * 1024, 12 * slab_bytes)))

    # ---- parameter glue (plain JAX, outside the kernel) ----
    inv1 = 1.0 / jnp.sqrt(params["bn1_var"] + eps)
    bn1_scale = params["bn1_gamma"] * inv1                        # (C,)
    bn1_shift = params["bn1_beta"] - params["bn1_mean"] * bn1_scale

    inv2 = 1.0 / jnp.sqrt(params["bn2_var"] + eps)
    bn2_scale = params["bn2_gamma"] * inv2                        # (Cb,)
    bn2_shift = params["bn2_beta"] - params["bn2_mean"] * bn2_scale

    # Fold BN2 into conv1 (valid because conv2 is 1x1 and the final mask re-zeroes
    # padded positions).  Store per-tap weight matrices as (K, Cb, C) so the kernel
    # slices each tap statically along the leading axis.
    w1 = params["w1"] * bn2_scale[:, None, None]                  # (Cb, C, K)
    b1 = bn2_scale * params["b1"] + bn2_shift                     # (Cb,)
    w1_taps = jnp.transpose(w1, (2, 0, 1))                        # (K, Cb, C)
    w2 = params["w2"][:, :, 0]                                    # (C, Cb)
    b2 = params["b2"]                                             # (C,)

    # Pack per-channel vectors into one small operand: one DMA, one padded tile.
    P = max(C, Cb)
    pvec = jnp.zeros((P, 4), jnp.float32)
    pvec = pvec.at[:C, 0].set(bn1_scale)
    pvec = pvec.at[:C, 1].set(bn1_shift)
    pvec = pvec.at[:C, 2].set(b2)
    pvec = pvec.at[:Cb, 3].set(b1)

    # Flatten batch into the lane axis: (N, C, L) -> (C, N*L); column = r*L + p.
    x_flat = jnp.transpose(x, (1, 0, 2)).reshape(C, N * L)
    mask_flat = mask.astype(jnp.float32).reshape(1, N * L)

    # Single loop-invariant position row (within-row position of each column).
    # Valid per grid block because every block starts on a batch-row boundary.
    pos_row = (jnp.arange(W, dtype=jnp.int32) % L).astype(jnp.float32).reshape(1, W)

    kernel = functools.partial(_residual_block_kernel,
                               dilation=dilation, kernel_size=K,
                               left_pad=left_pad, num_bottleneck=Cb,
                               row_len=L)

    out_flat = pl.pallas_call(
        kernel,
        out_shape=jax.ShapeDtypeStruct((C, N * L), x.dtype),
        grid_spec=pltpu.PrefetchScalarGridSpec(
            num_scalar_prefetch=0,
            grid=(N // Nb,),
            in_specs=[
                pl.BlockSpec((C, W), lambda b: (0, b)),           # x slab
                pl.BlockSpec((1, W), lambda b: (0, b)),           # sequence mask
                pl.BlockSpec((1, W), lambda b: (0, 0)),           # position row (invariant)
                pl.BlockSpec((K, Cb, C), lambda b: (0, 0, 0)),    # conv1 taps (BN2-folded)
                pl.BlockSpec((C, Cb), lambda b: (0, 0)),          # conv2 weights
                pl.BlockSpec((P, 4), lambda b: (0, 0)),           # packed per-channel vectors
            ],
            out_specs=pl.BlockSpec((C, W), lambda b: (0, b)),
        ),
        compiler_params=pltpu.CompilerParams(
            dimension_semantics=("parallel",),
            vmem_limit_bytes=vmem_limit),
    )(x_flat, mask_flat, pos_row, w1_taps, w2, pvec)

    return jnp.transpose(out_flat.reshape(C, N, L), (1, 0, 2))


# ---------------- pure-JAX reference (for verification only) ----------------
def reference(x, mask, params, dilation, kernel_size, eps=1e-5):
    def bn(h, gamma, beta, mean, var):
        return ((h - mean[None, :, None]) / jnp.sqrt(var[None, :, None] + eps)
                * gamma[None, :, None] + beta[None, :, None])

    def conv_same(h, w, b, d):
        K = w.shape[-1]
        total = d * (K - 1)
        left = total // 2
        right = total - left
        out = jax.lax.conv_general_dilated(
            h, w, window_strides=(1,), padding=[(left, right)],
            rhs_dilation=(d,), dimension_numbers=("NCH", "OIH", "NCH"))
        return out + b[None, :, None]

    m = mask[:, None, :].astype(x.dtype)
    input_x = x
    h = jnp.maximum(bn(x, params["bn1_gamma"], params["bn1_beta"],
                       params["bn1_mean"], params["bn1_var"]), 0.0)
    h = conv_same(h, params["w1"], params["b1"], dilation) * m
    h = jnp.maximum(bn(h, params["bn2_gamma"], params["bn2_beta"],
                       params["bn2_mean"], params["bn2_var"]), 0.0)
    h = conv_same(h, params["w2"], params["b2"], 1) * m
    return h + input_x


if __name__ == "__main__":
    # ResidualBlock(in_channels=16, dilation_rate=2, bottleneck_factor=0.5,
    #               kernel_size=3, activation_fn=ReLU)
    N, C, L = 2, 16, 128
    dilation, kernel_size, bottleneck_factor = 2, 3, 0.5
    Cb = math.floor(C * bottleneck_factor)             # 8

    key = jax.random.PRNGKey(0)
    ks = jax.random.split(key, 14)

    params = {
        "w1": 0.1 * jax.random.normal(ks[0], (Cb, C, kernel_size), jnp.float32),
        "b1": 0.1 * jax.random.normal(ks[1], (Cb,), jnp.float32),
        "w2": 0.1 * jax.random.normal(ks[2], (C, Cb, 1), jnp.float32),
        "b2": 0.1 * jax.random.normal(ks[3], (C,), jnp.float32),
        "bn1_gamma": 1.0 + 0.1 * jax.random.normal(ks[4], (C,), jnp.float32),
        "bn1_beta": 0.1 * jax.random.normal(ks[5], (C,), jnp.float32),
        "bn1_mean": 0.1 * jax.random.normal(ks[6], (C,), jnp.float32),
        "bn1_var": jax.random.uniform(ks[7], (C,), jnp.float32, 0.5, 1.5),
        "bn2_gamma": 1.0 + 0.1 * jax.random.normal(ks[8], (Cb,), jnp.float32),
        "bn2_beta": 0.1 * jax.random.normal(ks[9], (Cb,), jnp.float32),
        "bn2_mean": 0.1 * jax.random.normal(ks[10], (Cb,), jnp.float32),
        "bn2_var": jax.random.uniform(ks[11], (Cb,), jnp.float32, 0.5, 1.5),
    }

    x = jax.random.normal(ks[12], (N, C, L), jnp.float32)
    lengths = jnp.array([L - 7, L], dtype=jnp.int32)
    mask = jnp.arange(L)[None, :] < lengths[:, None]   # (N, L) bool

    out = residual_block(x, mask, params, dilation=dilation, kernel_size=kernel_size)
    out = jax.block_until_ready(out)

    ref = reference(x, mask, params, dilation, kernel_size)
    np.testing.assert_allclose(np.asarray(out), np.asarray(ref), atol=1e-4, rtol=1e-4)

    print("KERNEL_OK")
</pallas_src>

<mosaic_0001>
module attributes {stable_mosaic.version = 11 : i64} {
  func.func @_residual_block_kernel(%arg0: i32, %arg1: memref<16x128xf32, #tpu.memory_space<vmem>>, %arg2: memref<1x128xf32, #tpu.memory_space<vmem>>, %arg3: memref<1x128xf32, #tpu.memory_space<vmem>>, %arg4: memref<3x8x16xf32, #tpu.memory_space<vmem>>, %arg5: memref<16x8xf32, #tpu.memory_space<vmem>>, %arg6: memref<16x4xf32, #tpu.memory_space<vmem>>, %arg7: memref<16x128xf32, #tpu.memory_space<vmem>>) attributes {dimension_semantics = [#tpu.dimension_semantics<parallel>], iteration_bounds = array<i64: 2>, scalar_prefetch = 0 : i64, scratch_operands = 0 : i64, tpu.core_type = #tpu.core_type<tc>, window_params = [{transform_indices = @transform_0, window_bounds = array<i64: 16, 128>}, {transform_indices = @transform_1, window_bounds = array<i64: 1, 128>}, {pipeline_mode = #tpu.pipeline_mode<synchronous>, transform_indices = @transform_2, window_bounds = array<i64: 1, 128>}, {pipeline_mode = #tpu.pipeline_mode<synchronous>, transform_indices = @transform_3, window_bounds = array<i64: 3, 8, 16>}, {pipeline_mode = #tpu.pipeline_mode<synchronous>, transform_indices = @transform_4, window_bounds = array<i64: 16, 8>}, {pipeline_mode = #tpu.pipeline_mode<synchronous>, transform_indices = @transform_5, window_bounds = array<i64: 16, 4>}, {transform_indices = @transform_6, window_bounds = array<i64: 16, 128>}]} {
    %c0 = arith.constant 0 : index
    %c0_0 = arith.constant 0 : index
    %0 = vector.load %arg1[%c0, %c0_0] : memref<16x128xf32, #tpu.memory_space<vmem>>, vector<16x128xf32>
    %c0_1 = arith.constant 0 : index
    %c0_2 = arith.constant 0 : index
    %1 = vector.load %arg3[%c0_1, %c0_2] : memref<1x128xf32, #tpu.memory_space<vmem>>, vector<1x128xf32>
    %c0_3 = arith.constant 0 : index
    %c0_4 = arith.constant 0 : index
    %2 = vector.load %arg6[%c0_3, %c0_4] : memref<16x4xf32, #tpu.memory_space<vmem>>, vector<16x4xf32>
    %3 = vector.extract_strided_slice %2 {offsets = [0, 0], sizes = [16, 1], strides = [1, 1]} : vector<16x4xf32> to vector<16x1xf32>
    %4 = vector.extract_strided_slice %2 {offsets = [0, 1], sizes = [16, 1], strides = [1, 1]} : vector<16x4xf32> to vector<16x1xf32>
    %5 = vector.extract_strided_slice %2 {offsets = [0, 2], sizes = [16, 1], strides = [1, 1]} : vector<16x4xf32> to vector<16x1xf32>
    %6 = vector.extract_strided_slice %2 {offsets = [0, 3], sizes = [8, 1], strides = [1, 1]} : vector<16x4xf32> to vector<8x1xf32>
    %7 = vector.broadcast %3 : vector<16x1xf32> to vector<16x128xf32>
    %8 = arith.mulf %0, %7 : vector<16x128xf32>
    %9 = vector.broadcast %4 : vector<16x1xf32> to vector<16x128xf32>
    %10 = arith.addf %8, %9 : vector<16x128xf32>
    %cst = arith.constant 0.000000e+00 : f32
    %11 = vector.broadcast %cst : f32 to vector<16x128xf32>
    %12 = arith.maximumf %10, %11 : vector<16x128xf32>
    %c0_5 = arith.constant 0 : index
    %c0_6 = arith.constant 0 : index
    %c0_7 = arith.constant 0 : index
    %13 = vector.load %arg4[%c0_5, %c0_6, %c0_7] : memref<3x8x16xf32, #tpu.memory_space<vmem>>, vector<1x8x16xf32>
    %14 = vector.shape_cast %13 : vector<1x8x16xf32> to vector<8x16xf32>
    %cst_8 = arith.constant dense<0.000000e+00> : vector<8x128xf32>
    %15 = tpu.matmul %14, %12, %cst_8 {dimension_numbers = #tpu.dot_dimension_numbers<[1], [0], [0], [1], [0, 0, 1, 1], [], []>} : vector<8x16xf32>, vector<16x128xf32>, vector<8x128xf32> -> vector<8x128xf32>
    %16 = vector.extract_strided_slice %15 {offsets = [0, 126], sizes = [8, 2], strides = [1, 1]} : vector<8x128xf32> to vector<8x2xf32>
    %17 = vector.extract_strided_slice %15 {offsets = [0, 0], sizes = [8, 126], strides = [1, 1]} : vector<8x128xf32> to vector<8x126xf32>
    %18 = tpu.concatenate %16, %17 in 1 : vector<8x2xf32>, vector<8x126xf32> -> vector<8x128xf32>
    %cst_9 = arith.constant -2.000000e+00 : f32
    %19 = vector.broadcast %cst_9 : f32 to vector<1x128xf32>
    %20 = arith.addf %1, %19 : vector<1x128xf32>
    %cst_10 = arith.constant 0.000000e+00 : f32
    %21 = vector.broadcast %cst_10 : f32 to vector<1x128xf32>
    %22 = arith.cmpf oge, %20, %21 : vector<1x128xf32>
    %cst_11 = arith.constant -2.000000e+00 : f32
    %23 = vector.broadcast %cst_11 : f32 to vector<1x128xf32>
    %24 = arith.addf %1, %23 : vector<1x128xf32>
    %cst_12 = arith.constant 1.280000e+02 : f32
    %25 = vector.broadcast %cst_12 : f32 to vector<1x128xf32>
    %26 = arith.cmpf olt, %24, %25 : vector<1x128xf32>
    %27 = arith.andi %22, %26 : vector<1x128xi1>
    %28 = arith.extui %27 : vector<1x128xi1> to vector<1x128xi32>
    %29 = arith.sitofp %28 : vector<1x128xi32> to vector<1x128xf32>
    %30 = vector.broadcast %29 : vector<1x128xf32> to vector<8x128xf32>
    %31 = arith.mulf %18, %30 : vector<8x128xf32>
    %c1 = arith.constant 1 : index
    %c0_13 = arith.constant 0 : index
    %c0_14 = arith.constant 0 : index
    %32 = vector.load %arg4[%c1, %c0_13, %c0_14] : memref<3x8x16xf32, #tpu.memory_space<vmem>>, vector<1x8x16xf32>
    %33 = vector.shape_cast %32 : vector<1x8x16xf32> to vector<8x16xf32>
    %cst_15 = arith.constant dense<0.000000e+00> : vector<8x128xf32>
    %34 = tpu.matmul %33, %12, %cst_15 {dimension_numbers = #tpu.dot_dimension_numbers<[1], [0], [0], [1], [0, 0, 1, 1], [], []>} : vector<8x16xf32>, vector<16x128xf32>, vector<8x128xf32> -> vector<8x128xf32>
    %35 = arith.addf %31, %34 : vector<8x128xf32>
    %c2 = arith.constant 2 : index
    %c0_16 = arith.constant 0 : index
    %c0_17 = arith.constant 0 : index
    %36 = vector.load %arg4[%c2, %c0_16, %c0_17] : memref<3x8x16xf32, #tpu.memory_space<vmem>>, vector<1x8x16xf32>
    %37 = vector.shape_cast %36 : vector<1x8x16xf32> to vector<8x16xf32>
    %cst_18 = arith.constant dense<0.000000e+00> : vector<8x128xf32>
    %38 = tpu.matmul %37, %12, %cst_18 {dimension_numbers = #tpu.dot_dimension_numbers<[1], [0], [0], [1], [0, 0, 1, 1], [], []>} : vector<8x16xf32>, vector<16x128xf32>, vector<8x128xf32> -> vector<8x128xf32>
    %39 = vector.extract_strided_slice %38 {offsets = [0, 2], sizes = [8, 126], strides = [1, 1]} : vector<8x128xf32> to vector<8x126xf32>
    %40 = vector.extract_strided_slice %38 {offsets = [0, 0], sizes = [8, 2], strides = [1, 1]} : vector<8x128xf32> to vector<8x2xf32>
    %41 = tpu.concatenate %39, %40 in 1 : vector<8x126xf32>, vector<8x2xf32> -> vector<8x128xf32>
    %cst_19 = arith.constant 2.000000e+00 : f32
    %42 = vector.broadcast %cst_19 : f32 to vector<1x128xf32>
    %43 = arith.addf %1, %42 : vector<1x128xf32>
    %cst_20 = arith.constant 0.000000e+00 : f32
    %44 = vector.broadcast %cst_20 : f32 to vector<1x128xf32>
    %45 = arith.cmpf oge, %43, %44 : vector<1x128xf32>
    %cst_21 = arith.constant 2.000000e+00 : f32
    %46 = vector.broadcast %cst_21 : f32 to vector<1x128xf32>
    %47 = arith.addf %1, %46 : vector<1x128xf32>
    %cst_22 = arith.constant 1.280000e+02 : f32
    %48 = vector.broadcast %cst_22 : f32 to vector<1x128xf32>
    %49 = arith.cmpf olt, %47, %48 : vector<1x128xf32>
    %50 = arith.andi %45, %49 : vector<1x128xi1>
    %51 = arith.extui %50 : vector<1x128xi1> to vector<1x128xi32>
    %52 = arith.sitofp %51 : vector<1x128xi32> to vector<1x128xf32>
    %53 = vector.broadcast %52 : vector<1x128xf32> to vector<8x128xf32>
    %54 = arith.mulf %41, %53 : vector<8x128xf32>
    %55 = arith.addf %35, %54 : vector<8x128xf32>
    %56 = vector.broadcast %6 : vector<8x1xf32> to vector<8x128xf32>
    %57 = arith.addf %55, %56 : vector<8x128xf32>
    %cst_23 = arith.constant 0.000000e+00 : f32
    %58 = vector.broadcast %cst_23 : f32 to vector<8x128xf32>
    %59 = arith.maximumf %57, %58 : vector<8x128xf32>
    %c0_24 = arith.constant 0 : index
    %c0_25 = arith.constant 0 : index
    %60 = vector.load %arg5[%c0_24, %c0_25] : memref<16x8xf32, #tpu.memory_space<vmem>>, vector<16x8xf32>
    %cst_26 = arith.constant dense<0.000000e+00> : vector<16x128xf32>
    %61 = tpu.matmul %60, %59, %cst_26 {dimension_numbers = #tpu.dot_dimension_numbers<[1], [0], [0], [1], [0, 0, 1, 1], [], []>} : vector<16x8xf32>, vector<8x128xf32>, vector<16x128xf32> -> vector<16x128xf32>
    %62 = vector.broadcast %5 : vector<16x1xf32> to vector<16x128xf32>
    %63 = arith.addf %61, %62 : vector<16x128xf32>
    %c0_27 = arith.constant 0 : index
    %c0_28 = arith.constant 0 : index
    %64 = vector.load %arg2[%c0_27, %c0_28] : memref<1x128xf32, #tpu.memory_space<vmem>>, vector<1x128xf32>
    %65 = vector.broadcast %64 : vector<1x128xf32> to vector<16x128xf32>
    %66 = arith.mulf %63, %65 : vector<16x128xf32>
    %67 = arith.addf %66, %0 : vector<16x128xf32>
    %c0_29 = arith.constant 0 : index
    %c0_30 = arith.constant 0 : index
    %68 = vector.load %arg7[%c0_29, %c0_30] : memref<16x128xf32, #tpu.memory_space<vmem>>, vector<16x128xf32>
    tpu.vector_store %arg7[%c0_29, %c0_30], %67 {strides = array<i32>} : memref<16x128xf32, #tpu.memory_space<vmem>>, vector<16x128xf32>,
    return
  }
  func.func @transform_0(%arg0: i32) -> (i32, i32) {
    %c0_i32 = arith.constant 0 : i32
    %c0_i32_0 = arith.constant 0 : i32
    return %c0_i32, %arg0 : i32, i32
  }
  func.func @transform_1(%arg0: i32) -> (i32, i32) {
    %c0_i32 = arith.constant 0 : i32
    %c0_i32_0 = arith.constant 0 : i32
    return %c0_i32, %arg0 : i32, i32
  }
  func.func @transform_2(%arg0: i32) -> (i32, i32) {
    %c0_i32 = arith.constant 0 : i32
    %c0_i32_0 = arith.constant 0 : i32
    %c0_i32_1 = arith.constant 0 : i32
    return %c0_i32, %c0_i32_0 : i32, i32
  }
  func.func @transform_3(%arg0: i32) -> (i32, i32, i32) {
    %c0_i32 = arith.constant 0 : i32
    %c0_i32_0 = arith.constant 0 : i32
    %c0_i32_1 = arith.constant 0 : i32
    %c0_i32_2 = arith.constant 0 : i32
    return %c0_i32, %c0_i32_0, %c0_i32_1 : i32, i32, i32
  }
  func.func @transform_4(%arg0: i32) -> (i32, i32) {
    %c0_i32 = arith.constant 0 : i32
    %c0_i32_0 = arith.constant 0 : i32
    %c0_i32_1 = arith.constant 0 : i32
    return %c0_i32, %c0_i32_0 : i32, i32
  }
  func.func @transform_5(%arg0: i32) -> (i32, i32) {
    %c0_i32 = arith.constant 0 : i32
    %c0_i32_0 = arith.constant 0 : i32
    %c0_i32_1 = arith.constant 0 : i32
    return %c0_i32, %c0_i32_0 : i32, i32
  }
  func.func @transform_6(%arg0: i32) -> (i32, i32) {
    %c0_i32 = arith.constant 0 : i32
    %c0_i32_0 = arith.constant 0 : i32
    return %c0_i32, %arg0 : i32, i32
  }
}

</mosaic_0001>

<bundles_post_ra>
// kernel: tpu_custom_call.1
= control target key start
LH: loop header
LB: loop body
LE: loop exit
PB: predicated region body
PF: predicated region fallthrough
CT: control target
= control target key end

     0   :  { %11 = vsyncpa [#allocation4], 0  ;;  %s1274_s0 = inlined_call_operand.vmem [shape: f32[16,256], index: 0, kind: input, shape index: {}]   ;;  %s1275_s1 = inlined_call_operand.vmem [shape: f32[1,256], index: 1, kind: input, shape index: {}]   ;;  %s1276_s2 = inlined_call_operand.vmem [shape: f32[1,128], index: 2, kind: input, shape index: {}]   ;;  %s1277_s3 = inlined_call_operand.hbm [shape: f32[3,8,16], index: 3, kind: input, shape index: {}]   ;;  %s1278_s4 = inlined_call_operand.vmem [shape: f32[16,8], index: 4, kind: input, shape index: {}]   ;;  %s1279_s5 = inlined_call_operand.vmem [shape: f32[16,4], index: 5, kind: input, shape index: {}]   ;;  %s1280_s6 = inlined_call_operand.hbm [shape: f32[16,256], index: 6, kind: output, shape index: {}]  }
   0x1   :  { %12 = vsyncpa [#allocation5], 0 }
   0x2   :  { %14 = vsyncpa [#allocation5 + $0x1], 0  ;;  %s1091_s21 = smov 0   ;;  %s1093_s22 = smov 0  }
   0x3   :  { %s1095_s23 = smov 0   ;;  %s1097_s24 = smov 0  }
   0x4 LB: > { %s1112_s25 = sadd.s32 4294967295, %s1039_s24   ;;  %s821_s26 = sadd.s32 4294967294, %s1039_s24   ;;  %s1039_s24 = sphi %s1097_s24, %s1291_s24   ;;  %s1035_s23 = sphi %s1095_s23, %s1290_s23   ;;  %s1031_s22 = sphi %s1093_s22, %s1289_s22   ;;  %s1027_s21 = sphi %s1091_s21, %s1288_s21  }
   0x5   : > { %s1116_s27 = sadd.s32 1, %s1039_s24   ;;  %s27_s28 = sadd.s32 1, %s1035_s23 }
   0x6   : > { %s24_s29 = ssub.s32 %s1039_s24, %s1116_s27  ;;  %p34_p0 = scmp.ne.s32.totalorder %s1035_s23, %s1031_s22 }
   0x7   : > { %p25_p1 = scmp.eq.s32.totalorder %s24_s29, 0  ;;  %p35_p2 = scmp.eq.s32.totalorder %s1039_s24, 0 }
   0x8   : > { %p174_p3 = scmp.eq.s32.totalorder %s1112_s25, 1  ;;  %p179_p4 = scmp.ne.s32.totalorder %s1031_s22, %s1027_s21 }
   0x9   : > { %s1128_s30 = scalar_select %p25_p1, %s1035_s23, %s27_s28  }
   0xa   : > { %p1130_p5 = por %p35_p2, %p34_p0  ;;  %p1134_p6 = por %p174_p3, %p34_p0 }
   0xb   : > { %p180_p7 = scmp.eq.s32.totalorder %s821_s26, 1  ;;  %p822_p8 = scmp.ge.s32.totalorder %s1039_s24, 1 }
   0xc   : > { %s1283_s8 = scalar_select %p1134_p6, 1, 0 }
   0xd   : > { %p187_p9 = scmp.lt.s32.totalorder %s1039_s24, 3  ;;  %p1140_p10 = por %p180_p7, %p179_p4 }
   0xe   : > { %p895_p11 = scmp.eq.s32.totalorder %s1112_s25, 0  ;;  %s1041_s11 = smov [#allocation3]  }
   0xf   : > { %s1284_s9 = scalar_select %p1140_p10, 1, 0 }
  0x10   : > { %p1145_p12 = pnand %p822_p8, %p187_p9  ;;  %s202_s12 = sshll.u32 %s1041_s11, 4  ;;  %s203_s12 = int_to_ptr.vmem [resolvable:$true] %s202_s12 }
  0x11   : > { %s960_s13 = scalar_lea.vmem %s203_s12, 384  ;;  %p968_p7 = scmp.lt.s32.totalorder %s203_s12, %s203_s12 }
  0x12   : > { %p887_p13 = pneg %p1145_p12  ;;  %p961_p2 = scmp.ne.s32.totalorder %s203_s12, %s960_s13 }
  0x13   : > { %p969_p10 = scmp.lt.s32.totalorder %s960_s13, %s960_s13 }
  0x14   : > { %p888_p0 = pnand %p895_p11, %p887_p13 }
  0x15   : > { %p970_p6 = por %p969_p10, %p968_p7 }
  0x16   : > { %p951_p1 = pneg %p888_p0 }
  0x18   : > { %p963_p3 = pnand %p961_p2, %p951_p1 }
  0x1a   : > { %p964_p4 = pneg %p963_p3 }
  0x1c   : > { %p971_p8 = pnand %p970_p6, %p964_p4 }
  0x1e   : > { %974 = shalt.err (!%p971_p8)
}
  0x1f   : > { %s1042_s14 = smov 128   ;;  %s1043_s15 = smov 8  }
  0x20   : > { %890 = dma.hbm_to_vmem [thread:$0]  (!%p888_p0), %s1277_s3, 384, %s203_s12, [#allocation4], %s1042_s14, %s1042_s14, %s1043_s15  }
  0x21   : > { %p824_p9 = scmp.ge.s32.totalorder %s1039_s24, 2 }
  0x23   : > { %218 = sbr.rel (%p824_p9) target bundleno = 45 (0x2d), region = 32 }
  0x28   : > { %221 = sbr.rel (!%p1130_p5) target bundleno = 45 (0x2d), region = 36  ;;  %s223_s18 = sand.u32 (%p1130_p5), 1, %s1035_s23  }
  0x29   : > { %s826_s19 = sshll.u32 (%p1130_p5), %s1039_s24, 3  ;;  %s825_s20 = sshll.u32 (%p1130_p5), %s223_s18, 4 }
  0x2a   : > { %s227_s29 = scalar_lea.vmem (%p1130_p5), %s1274_s0, %s826_s19  ;;  %s225_s11 = scalar_lea.vmem (%p1130_p5), [#allocation2], %s825_s20 }
  0x2b   : > { %v258_v0 = vld [vmem:[%s227_s29] sm:$0xff] (%p1130_p5)  ;;  %v260_v1 = vld [vmem:[%s227_s29 + $0x10] sm:$0xff] (%p1130_p5) }
  0x2c   : > { %259 = vst [vmem:[%s225_s11] sm:$0xff] (%p1130_p5), %v258_v0  ;;  %261 = vst [vmem:[%s225_s11 + $0x8] sm:$0xff] (%p1130_p5), %v260_v1 }
  0x2d PF: > { %276 = sbr.rel (%p1145_p12) target bundleno = 726 (0x2d6), region = 78  ;;  %s279_s7 = sand.u32 (!%p1145_p12), 1, %s1031_s22  }
  0x2e   : > { %s1171_s12 = sshll.u32 (!%p1145_p12), %s279_s7, 4 }
  0x2f   : > { %s281_s13 = scalar_lea.vmem (!%p1145_p12), [#allocation2], %s1171_s12 }
  0x32   : > { %1018 = dma.done.wait (%p895_p11), [#allocation4], 384  }
  0x33   : > { %1020 = vsyncadd (%p895_p11), [#allocation4], 4294966912  ;;  %v1044_v2 = vmov 1   ;;  %v1045_v3 = vmov 0   ;;  %v322_v4 = vld [vmem:[%s1279_s5 + $0x8] sm:$0xff]  ;;  %v321_v5 = vld [vmem:[%s1279_s5] sm:$0xff]  ;;  %v433_v33 = vlaneseq }
  0x34   : > { %945 = vset.pattern.permute.xlu1 %v1044_v2  ;;  %944 = vset.pattern.permute.xlu0 %v1045_v3  ;;  %v1046_v6 = vmov 0.0   ;;  %vm1047_vm0 = vmmov 0   ;;  %v1048_v7 = vmov 3   ;;  %v1190_v8 = vld [vmem:[%s281_s13 + $0x8] sm:$0xff]  ;;  %v1193_v12 = vld [vmem:[%s281_s13] sm:$0xff]  ;;  %vm348_vm1 = vcmask 130048  }
  0x35   : > { %340 = vperm.xlu1 %945, %v322_v4   ;;  %330 = vperm.xlu0 %944, %v322_v4   ;;  %v347_v20 = vld [vmem:[#allocation3] sm:$0xff]  ;;  %v440_v21 = vld [vmem:[#allocation3 + $0x8] sm:$0xff]  ;;  %v516_v22 = vld [vmem:[#allocation3 + $0x10] sm:$0xff]  ;;  %vm624_vm2 = vcmask 64512   ;;  %s1049_s19 = smov 2   ;;  %v1050_v27 = vmov 2  }
  0x36   : > { %855 = vmatprep.subr.mxu0 %v1046_v6  ;;  %862 = vmatprep.subr.mxu1 %v1046_v6  ;;  %v614_v24 = vld [vmem:[%s1278_s4] sm:$0xff]  ;;  %s1051_s20 = smov 126   ;;  %v434_v35 = vshrl.u32 %v433_v33, 7  ;;  %v615_v50 = vld [vmem:[%s1278_s4 + $0x8] sm:$0xff]  ;;  %p315_p5 = scmp.lt.s32.totalorder %s1112_s25, 1 }
  0x37   : > { %859 = vmatprep.mubr.msk.f32.mxu0 %vm1047_vm0, %v1046_v6  ;;  %866 = vmatprep.mubr.msk.f32.mxu1 %vm1047_vm0, %v1046_v6  ;;  %v320_v31 = vld [vmem:[%s1276_s2] sm:$0x1]  ;;  %s314_s16 = scalar_lea.vmem [#allocation6], %s1171_s12  ;;  %s840_s18 = sshll.u32 %s1112_s25, 7 }
  0x38   : > { %v426_v32 = vadd.f32 -2.0, %v320_v31  ;;  %v594_v34 = vadd.f32 2.0, %v320_v31  ;;  %v435_v36 = vsub.s32 0, %v434_v35  ;;  %s316_s13 = scalar_select %p315_p5, %s1112_s25, 1 }
  0x39   : > { %336 = vperm.xlu1 %945, %v321_v5   ;;  %325 = vperm.xlu0 %944, %v321_v5   ;;  %s732_s17 = sshll.u32 %s314_s16, 4  ;;  %s1228_s26 = scalar_lea.hbm %s1280_s6, %s840_s18  ;;  %s1222_s17 = int_to_ptr.vmem [resolvable:$true] %s732_s17 }
  0x3a   : > { %vm427_vm3 = vcmp.ge.f32.partialorder %v426_v32, 0.0  ;;  %vm428_vm4 = vcmp.lt.f32.partialorder %v426_v32, 128.0  ;;  %vm595_vm6 = vcmp.ge.f32.partialorder %v594_v34, 0.0  ;;  %vm596_vm7 = vcmp.lt.f32.partialorder %v594_v34, 128.0  ;;  %s317_s15 = scalar_lea.vmem %s1275_s1, %s316_s13  ;;  %s1233_s12 = scalar_lea.sflag [#allocation5], %s279_s7 }
  0x3b   : > { %vm429_vm5 = vmand %vm427_vm3, %vm428_vm4  ;;  %v838_v54 = vld [vmem:[%s317_s15] ss:$0 sm:$0xff]  ;;  %s975_s25 = scalar_lea.vmem %s1222_s17, 256  ;;  %p1286_p10 = scmp.ne.s32.totalorder %s1283_s8, 0 }
  0x3c   : > { %v832_v37 = vsel %vm429_vm5, 1.0, %v1046_v6  ;;  %vm597_vm8 = vmand %vm595_vm6, %vm596_vm7  ;;  %p976_p6 = scmp.ne.s32.totalorder %s1222_s17, %s975_s25  ;;  %s1052_s28 = smov [#allocation6]  }
  0x3d   : > { %946 = vset.pattern.permute.xlu1 %v1048_v7  ;;  %948 = vset.pattern.permute.xlu0 %v1050_v27  ;;  %v436_v38 = vrot.slane %v832_v37, %v435_v36  ;;  %v835_v39 = vsel %vm597_vm8, 1.0, %v1046_v6  ;;  %s979_s29 = sshll.u32 %s1052_s28, 4  ;;  %s980_s29 = int_to_ptr.vmem [resolvable:$false] %s979_s29 }
  0x3e   : > { %609 = vperm.xlu1 %946, %v321_v5   ;;  %v604_v42 = vrot.slane %v835_v39, %v435_v36  ;;  %p977_p11 = pnand %p976_p6, %p1286_p10  ;;  %s981_s11 = scalar_lea.vmem %s980_s29, 512 }
  0x3f   : > { %p982_p13 = scmp.lt.s32.totalorder %s1222_s17, %s980_s29  ;;  %p983_p0 = scmp.lt.s32.totalorder %s981_s11, %s975_s25 }
  0x40   : > { %p978_p12 = pneg %p977_p11 }
  0x41   : > { %p984_p1 = por %p983_p0, %p982_p13 }
  0x42   : > { %947 = vset.pattern.permute.xlu1 %v1050_v27 }
  0x43   : > { %617 = vperm.xlu1 %947, %v321_v5   ;;  %p985_p2 = pnand %p984_p1, %p978_p12 }
  0xb0   : > { %v341_v9 = vpop.permute.xlu1 %340  ;;  %v331_v10 = vpop.permute.xlu0 %330 }
  0xb1   : > { %v334_v11 = vmul.f32 %v331_v10, %v1190_v8 }
  0xb3   : > { %v344_v13 = vadd.f32 %v341_v9, %v334_v11 }
  0xb4   : > { %v326_v14 = vpop.permute.xlu0 %325  ;;  %v337_v17 = vpop.permute.xlu1 %336 }
  0xb5   : > { %v346_v15 = vmax.f32 %v344_v13, 0.0  ;;  %v333_v16 = vmul.f32 %v326_v14, %v1193_v12 }
  0xb7   : > { %v343_v18 = vadd.f32 %v337_v17, %v333_v16  ;;  %856 = vmatpush3.msra.mxu0 %v346_v15  ;;  %863 = vmatpush3.msra.mxu1 %v346_v15 }
  0xb8   : > { %857 = vmatprep.subr.mxu0 %v1046_v6  ;;  %864 = vmatprep.subr.mxu1 %v1046_v6 }
  0xb9   : > { %v345_v19 = vmax.f32 %v343_v18, 0.0  ;;  %v610_v46 = vpop.permute.xlu1 %609 }
  0xbb   : > { %858 = vmatpush3.msra.mxu0 %v345_v19  ;;  %865 = vmatpush3.msra.mxu1 %v345_v19 }
  0xbc   : > { %860 = vmatmul.mubr.msk.f32.vlgmr.msra.gmra.mxu0 %vm348_vm1, %v347_v20  ;;  %869 = vmatprep.subr.mxu0 %v1046_v6 }
  0xbd   : > { %870 = vmatpush3.msra.mxu0 %v346_v15  ;;  %873 = vmatprep.mubr.msk.f32.mxu0 %vm1047_vm0, %v1046_v6 }
  0xbe   : > { %871 = vmatprep.subr.mxu0 %v1046_v6  ;;  %867 = vmatmul.mubr.msk.f32.vlgmr.msra.gmra.mxu1 %vm348_vm1, %v440_v21  ;;  %v618_v53 = vpop.permute.xlu1 %617 }
  0xbf   : > { %872 = vmatpush3.msra.mxu0 %v345_v19  ;;  %878 = vmatprep.mubr.msk.f32.mxu1 %vm624_vm2, %v614_v24 }
  0xc0   : > { %874 = vmatmul.mubr.msk.f32.vlgmr.msra.gmra.mxu0 %vm348_vm1, %v516_v22 }
 0x17c   : > { %v418_v23 = vpop.f32.mrf.mxu0 }
 0x17d   : > { %423 = vrot.lane.b32.xlu0 %v418_v23, %s1049_s19 }
 0x17e   : > { %v861_v25 = vpop.f32.mrf.mxu0  ;;  %v510_v26 = vpop.f32.mrf.mxu1 }
 0x180   : > { %v586_v28 = vpop.f32.mrf.mxu0  ;;  %v868_v29 = vpop.f32.mrf.mxu1 }
 0x181   : > { %591 = vrot.lane.b32.xlu0 %v586_v28, %s1051_s20 }
 0x182   : > { %v875_v30 = vpop.f32.mrf.mxu0 }
 0x185   : > { %621 = vperm.xlu0 %948, %v322_v4  }
 0x1ef   : > { %v424_v40 = vpop.permute.xlu0 %423 }
 0x1f0   : > { %v438_v41 = vmul.f32 %v436_v38, %v424_v40 }
 0x1f2   : > { %v514_v44 = vadd.f32 %v510_v26, %v438_v41 }
 0x1f3   : > { %v592_v43 = vpop.permute.xlu0 %591 }
 0x1f4   : > { %v606_v45 = vmul.f32 %v604_v42, %v592_v43 }
 0x1f6   : > { %v607_v47 = vadd.f32 %v606_v45, %v514_v44 }
 0x1f8   : > { %v612_v48 = vadd.f32 %v610_v46, %v607_v47 }
 0x1fa   : > { %v613_v49 = vmax.f32 %v612_v48, 0.0 }
 0x1fc   : > { %876 = vmatprep.subr.mxu1 %v613_v49 }
 0x1fd   : > { %877 = vmatpush3.msra.mxu1 %v613_v49 }
 0x1fe   : > { %879 = vmatmul.mubr.msk.f32.vlgmr.msra.gmra.mxu1 %vm624_vm2, %v615_v50 }
 0x200   : > { %v622_v51 = vpop.permute.xlu0 %621 }
 0x2be   : > { %v880_v52 = vpop.f32.mrf.mxu1 }
 0x2bf   : > { %v703_v55 = vadd.f32 %v880_v52, %v622_v51 }
 0x2c0   : > { %v697_v56 = vpop.f32.mrf.mxu1 }
 0x2c1   : > { %v698_v57 = vadd.f32 %v697_v56, %v618_v53  ;;  %v714_v58 = vmul.f32 %v838_v54, %v703_v55 }
 0x2c3   : > { %v713_v59 = vmul.f32 %v838_v54, %v698_v57  ;;  %v716_v60 = vadd.f32 %v714_v58, %v1190_v8 }
 0x2c5   : > { %v715_v61 = vadd.f32 %v713_v59, %v1193_v12  ;;  %718 = vst [vmem:[%s314_s16 + $0x8] sm:$0xff] %v716_v60 }
 0x2c7   : > { %717 = vst [vmem:[%s314_s16] sm:$0xff] %v715_v61 }
 0x2c8   : > { %988 = shalt.err (!%p985_p2)
}
 0x2c9   : > { %s989_s7 = scalar_lea.hbm %s1228_s26, 256  ;;  %s993_s14 = scalar_lea.hbm %s1280_s6, 512 }
 0x2ca   : > { %p990_p3 = scmp.ne.s32.totalorder %s1228_s26, %s989_s7  ;;  %p994_p8 = scmp.lt.s32.totalorder %s1228_s26, %s1280_s6 }
 0x2cb   : > { %p995_p5 = scmp.lt.s32.totalorder %s993_s14, %s989_s7 }
 0x2cc   : > { %p991_p4 = pnand %p990_p3, %p1286_p10 }
 0x2cd   : > { %p996_p6 = por %p995_p5, %p994_p8 }
 0x2ce   : > { %p992_p7 = pneg %p991_p4 }
 0x2d0   : > { %p997_p11 = pnand %p996_p6, %p992_p7 }
 0x2d2   : > { %1000 = shalt.err (!%p997_p11)
}
 0x2d3   : > { %s1053_s18 = smov 128   ;;  %s1054_s19 = smov 256  }
 0x2d4   : > { %s1055_s20 = smov 8  }
 0x2d5   : > { %885 = dma.vmem_to_hbm [thread:$0]  (%p1286_p10), %s1222_s17, 256, %s1228_s26, %s1233_s12, %s1053_s18, %s1054_s19, %s1055_s20  }
 0x2d6 PF: > { %s747_s25 = sand.u32 1, %s1027_s21   ;;  %p1287_p12 = scmp.ne.s32.totalorder %s1284_s9, 0 }
 0x2d7   : > { %s748_s28 = scalar_lea.sflag [#allocation5], %s747_s25 }
 0x2d8   : > { %p892_p13 = pnand %p824_p9, %p1287_p12 }
 0x2da   : > { %p893_p0 = pneg %p892_p13 }
 0x2dc   : > { %1022 = dma.done.wait (%p893_p0), %s748_s28, 256  }
 0x2dd   : > { %1024 = vsyncadd (%p893_p0), %s748_s28, 4294967040  ;;  %p17_p1 = scmp.ge.s32.totalorder %s1116_s27, 4   ;;  %s1288_s21 = smov %s1031_s22 }
 0x2de   : > { %s1289_s22 = smov %s1035_s23  ;;  %s1290_s23 = smov %s1128_s30 }
 0x2df   : > { %s1291_s24 = smov %s1116_s27  ;;  %19 = sbr.rel (!%p17_p1) target bundleno = 4 (0x4), region = 132 }
 0x2e4   :  { %753 = vsyncpa [#allocation4], 1 }
 0x2e5   :  { %755 = vsyncpa [#allocation4 + $0x1], 1 }
 0x2e6   :  { %756 = vsyncpa [#allocation5], 1 }
 0x2e7   :  { %758 = vsyncpa [#allocation5 + $0x1], 1 }

</bundles_post_ra>
